<compile_context>
chip_gen: v6e
topology: v6e:2x2x1
jax: 0.10.0
libtpu: 0.0.40
codegen_flags: <defaults>
</compile_context>

<pallas_src>
import math
import jax
import jax.numpy as jnp
from jax import lax
from jax.experimental import pallas as pl
from jax.experimental.pallas import tpu as pltpu

KERNEL_SIZES = (3, 5)
NUM_CHANNEL = 32
C_IN = 768
NUM_CLASSES = 4


def _round_up(a, m):
    return (a + m - 1) // m * m


def _make_kernel(kernel_sizes, num_channel, seq_len, pad):
    """seq_len = true output length L; pad = max(k//2)."""
    two_p = 2 * pad

    def kernel(x_ref, wf_ref, cb_ref, wl_ref, bl_ref, out_ref, zbuf_ref, mx_ref):
        l = pl.program_id(1)
        nl = pl.num_programs(1)
        tlp = x_ref.shape[1]                     # padded seq rows in this tile

        # Init running max at the first seq tile of each batch tile.
        @pl.when(l == 0)
        def _():
            mx_ref[...] = jnp.full_like(mx_ref, -jnp.inf)

        # One fused MXU matmul covering every tap of every conv:
        # (TB, TLp, 768) bf16 x (768, sum(k)*N) bf16 -> f32.
        z = lax.dot_general(
            x_ref[...], wf_ref[...],
            dimension_numbers=(((2,), (0,)), ((), ())),
            preferred_element_type=jnp.float32)            # (TB, TLp, G*N)

        # Halo carry: move the previous tile's last 2*pad matmul rows to the head,
        # then store the current matmul result after them.
        zbuf_ref[:, 0:two_p, :] = zbuf_ref[:, tlp:tlp + two_p, :]
        zbuf_ref[:, two_p:, :] = z

        # Valid (global) output time positions for this tile: masks out the halo
        # warm-up at l == 0 and the end-of-sequence alignment padding.
        t_glob = l * tlp - two_p + lax.broadcasted_iota(jnp.int32, (tlp, 1), 0)
        valid = jnp.logical_and(t_glob >= 0, t_glob < seq_len)[None, :, :]

        tile_maxes = []
        g = 0
        for k in kernel_sizes:
            shift = pad - (k // 2)               # align conv's own pad to the shared pad
            s = None
            for j in range(k):
                d = j + shift
                piece = zbuf_ref[:, d:d + tlp,
                                 g * num_channel:(g + 1) * num_channel]
                s = piece if s is None else s + piece
                g += 1
            s = jnp.where(valid, s, -jnp.inf)
            tile_maxes.append(jnp.max(s, axis=1))          # (TB, N)
        tile_max = jnp.concatenate(tile_maxes, axis=1)     # (TB, n_k*N)
        mx_ref[...] = jnp.maximum(mx_ref[...], tile_max)

        # Finalize once per batch tile: bias + ReLU hoisted past the max, then Linear.
        @pl.when(l == nl - 1)
        def _():
            feat = jnp.maximum(mx_ref[...] + cb_ref[...], 0.0)      # (TB, n_k*N)
            logits = jnp.dot(feat, wl_ref[...],
                             preferred_element_type=jnp.float32) + bl_ref[...]
            out_ref[...] = logits.astype(out_ref.dtype)

    return kernel


def bert_textcnn_forward(x, conv_ws, conv_bs, lin_w, lin_b,
                         kernel_sizes=KERNEL_SIZES, tb=8, tl=256):
    """x: (B, L, 768) f32; conv_ws[i]: (N, 768, k_i); lin_w: (4, n_k*N)."""
    B, L, C = x.shape
    n_k = len(kernel_sizes)
    N = conv_ws[0].shape[0]
    n_cls = lin_w.shape[0]
    P = max(k // 2 for k in kernel_sizes)
    G = sum(kernel_sizes)                      # total taps = fused column groups

    # ---- batch tiling ----
    if B <= tb:
        TB, Bp = B, B
    else:
        assert tb % 8 == 0
        TB = tb
        Bp = _round_up(B, TB)

    # ---- sequence tiling over the shared-padded length ----
    lp_raw = L + 2 * P
    nl = -(-lp_raw // tl)                      # cdiv
    TLp = _round_up(-(-lp_raw // nl), 8)       # sublane-aligned tile of padded rows
    Lp = TLp * nl
    assert TLp >= 2 * P

    # Single shared zero-padded input (pad once to the max pad), bf16 for the MXU.
    xp = jnp.pad(x, ((0, Bp - B), (P, Lp - L - P), (0, 0))).astype(jnp.bfloat16)

    # Fuse every tap of every conv into one (768, G*N) weight matrix.
    cols = []
    for k, w in zip(kernel_sizes, conv_ws):
        for j in range(k):
            cols.append(w[:, :, j].T)                         # (768, N)
    wf = jnp.concatenate(cols, axis=1).astype(jnp.bfloat16)   # (768, G*N)

    cbias = jnp.concatenate(conv_bs)[None, :].astype(jnp.float32)   # (1, n_k*N)
    wl_t = lin_w.T.astype(jnp.float32)                              # (n_k*N, 4)
    bl2 = lin_b[None, :].astype(jnp.float32)                        # (1, 4)

    cost = pl.CostEstimate(
        flops=2 * Bp * Lp * C * (G * N) + 2 * Bp * (n_k * N) * n_cls,
        transcendentals=0,
        bytes_accessed=(xp.size * 2 + wf.size * 2 + cbias.size * 4
                        + wl_t.size * 4 + bl2.size * 4 + Bp * n_cls * 4))

    out = pl.pallas_call(
        _make_kernel(kernel_sizes, N, L, P),
        out_shape=jax.ShapeDtypeStruct((Bp, n_cls), jnp.float32),
        grid_spec=pltpu.PrefetchScalarGridSpec(
            num_scalar_prefetch=0,
            grid=(Bp // TB, nl),
            in_specs=[
                pl.BlockSpec((TB, TLp, C), lambda b, l: (b, l, 0)),
                pl.BlockSpec((C, G * N), lambda b, l: (0, 0)),
                pl.BlockSpec((1, n_k * N), lambda b, l: (0, 0)),
                pl.BlockSpec((n_k * N, n_cls), lambda b, l: (0, 0)),
                pl.BlockSpec((1, n_cls), lambda b, l: (0, 0)),
            ],
            out_specs=pl.BlockSpec((TB, n_cls), lambda b, l: (b, 0)),
            scratch_shapes=[
                pltpu.VMEM((TB, TLp + 2 * P, G * N), jnp.float32),  # matmul + halo
                pltpu.VMEM((TB, n_k * N), jnp.float32),             # running max
            ]),
        compiler_params=pltpu.CompilerParams(
            dimension_semantics=("parallel", "arbitrary"),
            vmem_limit_bytes=32 * 1024 * 1024),
        cost_estimate=cost,
    )(xp, wf, cbias, wl_t, bl2)
    return out[:B]


def init_params(key, kernel_sizes=KERNEL_SIZES, num_channel=NUM_CHANNEL, c_in=C_IN):
    """Deterministic PyTorch-shaped parameter init (uniform, kaiming-style bounds)."""
    keys = jax.random.split(key, 2 * len(kernel_sizes) + 2)
    conv_ws, conv_bs = [], []
    for i, k in enumerate(kernel_sizes):
        bound = 1.0 / math.sqrt(c_in * k)
        conv_ws.append(jax.random.uniform(keys[2 * i], (num_channel, c_in, k),
                                          jnp.float32, -bound, bound))
        conv_bs.append(jax.random.uniform(keys[2 * i + 1], (num_channel,),
                                          jnp.float32, -bound, bound))
    cnn_out = len(kernel_sizes) * num_channel
    bound = 1.0 / math.sqrt(cnn_out)
    lin_w = jax.random.uniform(keys[-2], (NUM_CLASSES, cnn_out), jnp.float32, -bound, bound)
    lin_b = jax.random.uniform(keys[-1], (NUM_CLASSES,), jnp.float32, -bound, bound)
    return conv_ws, conv_bs, lin_w, lin_b


def reference_forward(x, conv_ws, conv_bs, lin_w, lin_b, kernel_sizes=KERNEL_SIZES):
    """Plain-JAX reference mirroring the PyTorch forward (NCW Conv1d)."""
    xt = jnp.transpose(x, (0, 2, 1))  # (B, C, L)
    feats = []
    for k, w, b in zip(kernel_sizes, conv_ws, conv_bs):
        y = lax.conv_general_dilated(
            xt, w, window_strides=(1,), padding=[(k // 2, k // 2)],
            dimension_numbers=("NCH", "OIH", "NCH"))
        y = jax.nn.relu(y + b[None, :, None])
        feats.append(jnp.max(y, axis=2))
    feat = jnp.concatenate(feats, axis=1)
    return feat @ lin_w.T + lin_b[None, :]


if __name__ == "__main__":
    key = jax.random.PRNGKey(0)
    kx, kp, kx2 = jax.random.split(key, 3)
    B, L = 2, 8
    x = jax.random.normal(kx, (B, L, C_IN), jnp.float32)
    conv_ws, conv_bs, lin_w, lin_b = init_params(kp)

    ref = reference_forward(x, conv_ws, conv_bs, lin_w, lin_b)

    # Default tiling (single seq tile at this toy length).
    out = jax.block_until_ready(bert_textcnn_forward(x, conv_ws, conv_bs, lin_w, lin_b))
    assert out.shape == (B, NUM_CLASSES)
    assert jnp.allclose(out, ref, atol=2e-2, rtol=2e-2), (out, ref)

    # Force multiple seq tiles to exercise the halo-carry / running-max path.
    out2 = jax.block_until_ready(
        bert_textcnn_forward(x, conv_ws, conv_bs, lin_w, lin_b, tl=8))
    assert jnp.allclose(out2, ref, atol=2e-2, rtol=2e-2), (out2, ref)

    # Exercise multiple batch tiles (parallel grid axis) as well.
    xb = jax.random.normal(kx2, (16, L, C_IN), jnp.float32)
    refb = reference_forward(xb, conv_ws, conv_bs, lin_w, lin_b)
    outb = jax.block_until_ready(
        bert_textcnn_forward(xb, conv_ws, conv_bs, lin_w, lin_b, tb=8, tl=8))
    assert jnp.allclose(outb, refb, atol=2e-2, rtol=2e-2), (outb, refb)

    print("KERNEL_OK")
</pallas_src>

<mosaic_0001>
module attributes {stable_mosaic.version = 11 : i64} {
  func.func @kernel(%arg0: i32, %arg1: i32, %arg2: memref<2x16x768xbf16, #tpu.memory_space<vmem>>, %arg3: memref<768x256xbf16, #tpu.memory_space<vmem>>, %arg4: memref<1x64xf32, #tpu.memory_space<vmem>>, %arg5: memref<64x4xf32, #tpu.memory_space<vmem>>, %arg6: memref<1x4xf32, #tpu.memory_space<vmem>>, %arg7: memref<2x4xf32, #tpu.memory_space<vmem>>, %arg8: memref<2x20x256xf32, #tpu.memory_space<vmem>>, %arg9: memref<2x64xf32, #tpu.memory_space<vmem>>) attributes {dimension_semantics = [#tpu.dimension_semantics<parallel>, #tpu.dimension_semantics<arbitrary>], iteration_bounds = array<i64: 1, 1>, scalar_prefetch = 0 : i64, scratch_operands = 2 : i64, tpu.core_type = #tpu.core_type<tc>, window_params = [{transform_indices = @transform_0, window_bounds = array<i64: 2, 16, 768>}, {pipeline_mode = #tpu.pipeline_mode<synchronous>, transform_indices = @transform_1, window_bounds = array<i64: 768, 256>}, {pipeline_mode = #tpu.pipeline_mode<synchronous>, transform_indices = @transform_2, window_bounds = array<i64: 1, 64>}, {pipeline_mode = #tpu.pipeline_mode<synchronous>, transform_indices = @transform_3, window_bounds = array<i64: 64, 4>}, {pipeline_mode = #tpu.pipeline_mode<synchronous>, transform_indices = @transform_4, window_bounds = array<i64: 1, 4>}, {transform_indices = @transform_5, window_bounds = array<i64: 2, 4>}]} {
    %c0_i32 = arith.constant 0 : i32
    %0 = arith.cmpi eq, %arg1, %c0_i32 : i32
    %1 = arith.extui %0 : i1 to i32
    %c0_i32_0 = arith.constant 0 : i32
    %2 = arith.cmpi ne, %1, %c0_i32_0 : i32
    scf.if %2 {
      %cst_37 = arith.constant 0xFF800000 : f32
      %51 = vector.broadcast %cst_37 : f32 to vector<2x64xf32>
      %c0_38 = arith.constant 0 : index
      %c0_39 = arith.constant 0 : index
      %52 = vector.load %arg9[%c0_38, %c0_39] : memref<2x64xf32, #tpu.memory_space<vmem>>, vector<2x64xf32>
      tpu.vector_store %arg9[%c0_38, %c0_39], %51 {strides = array<i32>} : memref<2x64xf32, #tpu.memory_space<vmem>>, vector<2x64xf32>,
    } else {
    }
    %c0 = arith.constant 0 : index
    %c0_1 = arith.constant 0 : index
    %c0_2 = arith.constant 0 : index
    %3 = vector.load %arg2[%c0, %c0_1, %c0_2] : memref<2x16x768xbf16, #tpu.memory_space<vmem>>, vector<2x16x768xbf16>
    %c0_3 = arith.constant 0 : index
    %c0_4 = arith.constant 0 : index
    %4 = vector.load %arg3[%c0_3, %c0_4] : memref<768x256xbf16, #tpu.memory_space<vmem>>, vector<768x256xbf16>
    %cst = arith.constant dense<0.000000e+00> : vector<2x16x256xf32>
    %5 = tpu.matmul %3, %4, %cst {dimension_numbers = #tpu.dot_dimension_numbers<[2], [0], [0, 1], [1], [0, 0, 0, 1, 1, 1], [], []>} : vector<2x16x768xbf16>, vector<768x256xbf16>, vector<2x16x256xf32> -> vector<2x16x256xf32>
    %c0_5 = arith.constant 0 : index
    %c16 = arith.constant 16 : index
    %c0_6 = arith.constant 0 : index
    %6 = vector.load %arg8[%c0_5, %c16, %c0_6] : memref<2x20x256xf32, #tpu.memory_space<vmem>>, vector<2x4x256xf32>
    %c0_7 = arith.constant 0 : index
    %c0_8 = arith.constant 0 : index
    %c0_9 = arith.constant 0 : index
    %7 = vector.load %arg8[%c0_7, %c0_8, %c0_9] : memref<2x20x256xf32, #tpu.memory_space<vmem>>, vector<2x4x256xf32>
    tpu.vector_store %arg8[%c0_7, %c0_8, %c0_9], %6 {strides = array<i32>} : memref<2x20x256xf32, #tpu.memory_space<vmem>>, vector<2x4x256xf32>,
    %c0_10 = arith.constant 0 : index
    %c4 = arith.constant 4 : index
    %c0_11 = arith.constant 0 : index
    %8 = vector.load %arg8[%c0_10, %c4, %c0_11] : memref<2x20x256xf32, #tpu.memory_space<vmem>>, vector<2x16x256xf32>
    tpu.vector_store %arg8[%c0_10, %c4, %c0_11], %5 {strides = array<i32>} : memref<2x20x256xf32, #tpu.memory_space<vmem>>, vector<2x16x256xf32>,
    %c16_i32 = arith.constant 16 : i32
    %9 = arith.muli %arg1, %c16_i32 : i32
    %c4_i32 = arith.constant 4 : i32
    %10 = arith.subi %9, %c4_i32 : i32
    %11 = tpu.iota {dimensions = array<i32: 0>} : vector<16x1xi32>
    %12 = vector.broadcast %10 : i32 to vector<16x1xi32>
    %13 = arith.addi %12, %11 : vector<16x1xi32>
    %c0_i32_12 = arith.constant 0 : i32
    %14 = vector.broadcast %c0_i32_12 : i32 to vector<16x1xi32>
    %15 = arith.cmpi sge, %13, %14 : vector<16x1xi32>
    %c8_i32 = arith.constant 8 : i32
    %16 = vector.broadcast %c8_i32 : i32 to vector<16x1xi32>
    %17 = arith.cmpi slt, %13, %16 : vector<16x1xi32>
    %18 = arith.andi %15, %17 : vector<16x1xi1>
    %19 = vector.shape_cast %18 : vector<16x1xi1> to vector<1x16x1xi1>
    %c0_13 = arith.constant 0 : index
    %c1 = arith.constant 1 : index
    %c0_14 = arith.constant 0 : index
    %20 = vector.load %arg8[%c0_13, %c1, %c0_14] : memref<2x20x256xf32, #tpu.memory_space<vmem>>, vector<2x16x32xf32>
    %c0_15 = arith.constant 0 : index
    %c2 = arith.constant 2 : index
    %c32 = arith.constant 32 : index
    %21 = vector.load %arg8[%c0_15, %c2, %c32] : memref<2x20x256xf32, #tpu.memory_space<vmem>>, vector<2x16x32xf32>
    %22 = arith.addf %20, %21 : vector<2x16x32xf32>
    %c0_16 = arith.constant 0 : index
    %c3 = arith.constant 3 : index
    %c64 = arith.constant 64 : index
    %23 = vector.load %arg8[%c0_16, %c3, %c64] : memref<2x20x256xf32, #tpu.memory_space<vmem>>, vector<2x16x32xf32>
    %24 = arith.addf %22, %23 : vector<2x16x32xf32>
    %cst_17 = arith.constant 0xFF800000 : f32
    %25 = vector.shape_cast %19 : vector<1x16x1xi1> to vector<1x16x1xi1>
    %26 = vector.broadcast %25 : vector<1x16x1xi1> to vector<2x16x32xi1>
    %27 = vector.broadcast %cst_17 : f32 to vector<2x16x32xf32>
    %28 = arith.select %26, %24, %27 : vector<2x16x32xi1>, vector<2x16x32xf32>
    %cst_18 = arith.constant dense<0xFF800000> : vector<2x32xf32>
    %29 = vector.multi_reduction <maximumf>, %28, %cst_18 [1] : vector<2x16x32xf32> to vector<2x32xf32>
    %c0_19 = arith.constant 0 : index
    %c0_20 = arith.constant 0 : index
    %c96 = arith.constant 96 : index
    %30 = vector.load %arg8[%c0_19, %c0_20, %c96] : memref<2x20x256xf32, #tpu.memory_space<vmem>>, vector<2x16x32xf32>
    %c0_21 = arith.constant 0 : index
    %c1_22 = arith.constant 1 : index
    %c128 = arith.constant 128 : index
    %31 = vector.load %arg8[%c0_21, %c1_22, %c128] : memref<2x20x256xf32, #tpu.memory_space<vmem>>, vector<2x16x32xf32>
    %32 = arith.addf %30, %31 : vector<2x16x32xf32>
    %c0_23 = arith.constant 0 : index
    %c2_24 = arith.constant 2 : index
    %c160 = arith.constant 160 : index
    %33 = vector.load %arg8[%c0_23, %c2_24, %c160] : memref<2x20x256xf32, #tpu.memory_space<vmem>>, vector<2x16x32xf32>
    %34 = arith.addf %32, %33 : vector<2x16x32xf32>
    %c0_25 = arith.constant 0 : index
    %c3_26 = arith.constant 3 : index
    %c192 = arith.constant 192 : index
    %35 = vector.load %arg8[%c0_25, %c3_26, %c192] : memref<2x20x256xf32, #tpu.memory_space<vmem>>, vector<2x16x32xf32>
    %36 = arith.addf %34, %35 : vector<2x16x32xf32>
    %c0_27 = arith.constant 0 : index
    %c4_28 = arith.constant 4 : index
    %c224 = arith.constant 224 : index
    %37 = vector.load %arg8[%c0_27, %c4_28, %c224] : memref<2x20x256xf32, #tpu.memory_space<vmem>>, vector<2x16x32xf32>
    %38 = arith.addf %36, %37 : vector<2x16x32xf32>
    %cst_29 = arith.constant 0xFF800000 : f32
    %39 = vector.shape_cast %19 : vector<1x16x1xi1> to vector<1x16x1xi1>
    %40 = vector.broadcast %39 : vector<1x16x1xi1> to vector<2x16x32xi1>
    %41 = vector.broadcast %cst_29 : f32 to vector<2x16x32xf32>
    %42 = arith.select %40, %38, %41 : vector<2x16x32xi1>, vector<2x16x32xf32>
    %cst_30 = arith.constant dense<0xFF800000> : vector<2x32xf32>
    %43 = vector.multi_reduction <maximumf>, %42, %cst_30 [1] : vector<2x16x32xf32> to vector<2x32xf32>
    %44 = tpu.concatenate %29, %43 in 1 : vector<2x32xf32>, vector<2x32xf32> -> vector<2x64xf32>
    %c0_31 = arith.constant 0 : index
    %c0_32 = arith.constant 0 : index
    %45 = vector.load %arg9[%c0_31, %c0_32] : memref<2x64xf32, #tpu.memory_space<vmem>>, vector<2x64xf32>
    %46 = arith.maximumf %45, %44 : vector<2x64xf32>
    %c0_33 = arith.constant 0 : index
    %c0_34 = arith.constant 0 : index
    %47 = vector.load %arg9[%c0_33, %c0_34] : memref<2x64xf32, #tpu.memory_space<vmem>>, vector<2x64xf32>
    tpu.vector_store %arg9[%c0_33, %c0_34], %46 {strides = array<i32>} : memref<2x64xf32, #tpu.memory_space<vmem>>, vector<2x64xf32>,
    %c0_i32_35 = arith.constant 0 : i32
    %48 = arith.cmpi eq, %arg1, %c0_i32_35 : i32
    %49 = arith.extui %48 : i1 to i32
    %c0_i32_36 = arith.constant 0 : i32
    %50 = arith.cmpi ne, %49, %c0_i32_36 : i32
    scf.if %50 {
      %c0_37 = arith.constant 0 : index
      %c0_38 = arith.constant 0 : index
      %51 = vector.load %arg9[%c0_37, %c0_38] : memref<2x64xf32, #tpu.memory_space<vmem>>, vector<2x64xf32>
      %c0_39 = arith.constant 0 : index
      %c0_40 = arith.constant 0 : index
      %52 = vector.load %arg4[%c0_39, %c0_40] : memref<1x64xf32, #tpu.memory_space<vmem>>, vector<1x64xf32>
      %53 = vector.broadcast %52 : vector<1x64xf32> to vector<2x64xf32>
      %54 = arith.addf %51, %53 : vector<2x64xf32>
      %cst_41 = arith.constant 0.000000e+00 : f32
      %55 = vector.broadcast %cst_41 : f32 to vector<2x64xf32>
      %56 = arith.maximumf %54, %55 : vector<2x64xf32>
      %c0_42 = arith.constant 0 : index
      %c0_43 = arith.constant 0 : index
      %57 = vector.load %arg5[%c0_42, %c0_43] : memref<64x4xf32, #tpu.memory_space<vmem>>, vector<64x4xf32>
      %cst_44 = arith.constant dense<0.000000e+00> : vector<2x4xf32>
      %58 = tpu.matmul %56, %57, %cst_44 {dimension_numbers = #tpu.dot_dimension_numbers<[1], [0], [0], [1], [0, 0, 1, 1], [], []>} : vector<2x64xf32>, vector<64x4xf32>, vector<2x4xf32> -> vector<2x4xf32>
      %c0_45 = arith.constant 0 : index
      %c0_46 = arith.constant 0 : index
      %59 = vector.load %arg6[%c0_45, %c0_46] : memref<1x4xf32, #tpu.memory_space<vmem>>, vector<1x4xf32>
      %60 = vector.broadcast %59 : vector<1x4xf32> to vector<2x4xf32>
      %61 = arith.addf %58, %60 : vector<2x4xf32>
      %c0_47 = arith.constant 0 : index
      %c0_48 = arith.constant 0 : index
      %62 = vector.load %arg7[%c0_47, %c0_48] : memref<2x4xf32, #tpu.memory_space<vmem>>, vector<2x4xf32>
      tpu.vector_store %arg7[%c0_47, %c0_48], %61 {strides = array<i32>} : memref<2x4xf32, #tpu.memory_space<vmem>>, vector<2x4xf32>,
    } else {
    }
    return
  }
  func.func @transform_0(%arg0: i32, %arg1: i32) -> (i32, i32, i32) {
    %c0_i32 = arith.constant 0 : i32
    %c0_i32_0 = arith.constant 0 : i32
    return %arg0, %arg1, %c0_i32 : i32, i32, i32
  }
  func.func @transform_1(%arg0: i32, %arg1: i32) -> (i32, i32) {
    %c0_i32 = arith.constant 0 : i32
    %c0_i32_0 = arith.constant 0 : i32
    %c0_i32_1 = arith.constant 0 : i32
    return %c0_i32, %c0_i32_0 : i32, i32
  }
  func.func @transform_2(%arg0: i32, %arg1: i32) -> (i32, i32) {
    %c0_i32 = arith.constant 0 : i32
    %c0_i32_0 = arith.constant 0 : i32
    %c0_i32_1 = arith.constant 0 : i32
    return %c0_i32, %c0_i32_0 : i32, i32
  }
  func.func @transform_3(%arg0: i32, %arg1: i32) -> (i32, i32) {
    %c0_i32 = arith.constant 0 : i32
    %c0_i32_0 = arith.constant 0 : i32
    %c0_i32_1 = arith.constant 0 : i32
    return %c0_i32, %c0_i32_0 : i32, i32
  }
  func.func @transform_4(%arg0: i32, %arg1: i32) -> (i32, i32) {
    %c0_i32 = arith.constant 0 : i32
    %c0_i32_0 = arith.constant 0 : i32
    %c0_i32_1 = arith.constant 0 : i32
    return %c0_i32, %c0_i32_0 : i32, i32
  }
  func.func @transform_5(%arg0: i32, %arg1: i32) -> (i32, i32) {
    %c0_i32 = arith.constant 0 : i32
    %c0_i32_0 = arith.constant 0 : i32
    return %arg0, %c0_i32 : i32, i32
  }
}

</mosaic_0001>

<bundles_post_ra>
// kernel: tpu_custom_call.1
= control target key start
LH: loop header
LB: loop body
LE: loop exit
PB: predicated region body
PF: predicated region fallthrough
CT: control target
= control target key end

     0   :  { %10 = vsyncpa [#allocation5], 0  ;;  %s1963_s0 = inlined_call_operand.hbm [shape: bf16[2,16,768], index: 0, kind: input, shape index: {}]   ;;  %s1964_s1 = inlined_call_operand.hbm [shape: bf16[768,256], index: 1, kind: input, shape index: {}]   ;;  %s1965_s2 = inlined_call_operand.vmem [shape: f32[1,64], index: 2, kind: input, shape index: {}]   ;;  %s1966_s3 = inlined_call_operand.vmem [shape: f32[64,4], index: 3, kind: input, shape index: {}]   ;;  %s1967_s4 = inlined_call_operand.vmem [shape: f32[1,4], index: 4, kind: input, shape index: {}]   ;;  %s1968_s5 = inlined_call_operand.hbm [shape: f32[2,4], index: 5, kind: output, shape index: {}]  }
   0x1   :  { %11 = vsyncpa [#allocation8], 0 }
   0x2   :  { %12 = vsyncpa [#allocation6], 0  ;;  %s1744_s18 = smov [#allocation4]  }
   0x3   :  { %s18_s19 = sshll.u32 %s1744_s18, 4  ;;  %s19_s19 = int_to_ptr.vmem [resolvable:$true] %s18_s19 }
   0x4   :  { %s1686_s20 = scalar_lea.vmem %s19_s19, 1536  ;;  %p1691_p1 = scmp.lt.s32.totalorder %s19_s19, %s19_s19 }
   0x5   :  { %p1687_p0 = scmp.ne.s32.totalorder %s19_s19, %s1686_s20  ;;  %p1692_p2 = scmp.lt.s32.totalorder %s1686_s20, %s1686_s20 }
   0x7   :  { %p1693_p3 = por %p1692_p2, %p1691_p1 }
   0x9   :  { %p1694_p4 = pnand %p1693_p3, %p1687_p0 }
   0xb   :  { %1697 = shalt.err (!%p1694_p4)
}
   0xc   :  { %s1745_s21 = smov 384   ;;  %s1746_s22 = smov 24  }
   0xd   :  { %24 = dma.hbm_to_vmem [thread:$0]  %s1963_s0, 1536, %s19_s19, [#allocation5], %s1745_s21, %s1745_s21, %s1746_s22  }
   0xe   :  { %s1747_s25 = smov [#allocation7]  }
   0xf   :  { %s30_s26 = sshll.u32 %s1747_s25, 4  ;;  %s31_s26 = int_to_ptr.vmem [resolvable:$true] %s30_s26 }
  0x10   :  { %s1706_s27 = scalar_lea.vmem %s31_s26, 12288  ;;  %p1711_p6 = scmp.lt.s32.totalorder %s31_s26, %s31_s26 }
  0x11   :  { %p1707_p5 = scmp.ne.s32.totalorder %s31_s26, %s1706_s27  ;;  %p1712_p7 = scmp.lt.s32.totalorder %s1706_s27, %s1706_s27 }
  0x13   :  { %p1713_p8 = por %p1712_p7, %p1711_p6 }
  0x15   :  { %p1714_p9 = pnand %p1713_p8, %p1707_p5 }
  0x17   :  { %1717 = shalt.err (!%p1714_p9)
}
  0x18   :  { %s1748_s28 = smov 128   ;;  %s1749_s29 = smov 8  }
  0x19   :  { %36 = dma.hbm_to_vmem [thread:$0]  %s1964_s1, 12288, %s31_s26, [#allocation8], %s1748_s28, %s1748_s28, %s1749_s29  }
  0x1a   :  { %1738 = dma.done.wait [#allocation5], 1536  }
  0x1b   :  { %1739 = vsyncadd [#allocation5], 4294965760 }
  0x1c   :  { %1740 = dma.done.wait [#allocation8], 12288  }
  0x1d   :  { %1741 = vsyncadd [#allocation8], 4294955008  ;;  %v1516_v0 = vld [vmem:[#allocation7 + $0x74] ss:$8 sps:$4 sm:$0xff]   ;;  %v1520_v2 = vld [vmem:[#allocation7 + $0x70] ss:$8 sps:$4 sm:$0xff]  }
  0x1e   :  { %v1518_v1 = vld [vmem:[#allocation7 + $0x174] ss:$8 sps:$4 sm:$0xff]   ;;  %703 = vmatprep.subr.bf16.mxu0 %v1516_v0  ;;  %v1521_v3 = vld [vmem:[#allocation7 + $0x170] ss:$8 sps:$4 sm:$0xff]   ;;  %v1522_v4 = vld [vmem:[#allocation7 + $0x64] ss:$8 sps:$4 sm:$0xff]  }
  0x1f   :  { %756 = vmatprep.subr.bf16.mxu1 %v1518_v1  ;;  %704 = vmatpush1.bf16.msra.mxu0 %v1520_v2  ;;  %v1524_v5 = vld [vmem:[#allocation7 + $0x164] ss:$8 sps:$4 sm:$0xff]   ;;  %v1526_v6 = vld [vmem:[#allocation7 + $0x60] ss:$8 sps:$4 sm:$0xff]   ;;  %v1528_v8 = vld [vmem:[#allocation7 + $0x54] ss:$8 sps:$4 sm:$0xff]  }
  0x20   :  { %757 = vmatpush1.bf16.msra.mxu1 %v1521_v3  ;;  %705 = vmatprep.subr.bf16.mxu0 %v1522_v4  ;;  %v1527_v7 = vld [vmem:[#allocation7 + $0x160] ss:$8 sps:$4 sm:$0xff]   ;;  %v1530_v9 = vld [vmem:[#allocation7 + $0x154] ss:$8 sps:$4 sm:$0xff]   ;;  %v1532_v10 = vld [vmem:[#allocation7 + $0x50] ss:$8 sps:$4 sm:$0xff]  }
  0x21   :  { %758 = vmatprep.subr.bf16.mxu1 %v1524_v5  ;;  %v1533_v11 = vld [vmem:[#allocation7 + $0x150] ss:$8 sps:$4 sm:$0xff]   ;;  %v1534_v12 = vld [vmem:[#allocation7 + $0x44] ss:$8 sps:$4 sm:$0xff]   ;;  %v1538_v14 = vld [vmem:[#allocation7 + $0x40] ss:$8 sps:$4 sm:$0xff]  }
  0x22   :  { %v1536_v13 = vld [vmem:[#allocation7 + $0x144] ss:$8 sps:$4 sm:$0xff]   ;;  %v1539_v15 = vld [vmem:[#allocation7 + $0x140] ss:$8 sps:$4 sm:$0xff]   ;;  %v1540_v16 = vld [vmem:[#allocation7 + $0x34] ss:$8 sps:$4 sm:$0xff]  }
  0x23   :  { %706 = vmatpush1.bf16.msra.mxu0 %v1526_v6  ;;  %v1542_v17 = vld [vmem:[#allocation7 + $0x134] ss:$8 sps:$4 sm:$0xff]   ;;  %v1544_v18 = vld [vmem:[#allocation7 + $0x30] ss:$8 sps:$4 sm:$0xff]   ;;  %v1546_v20 = vld [vmem:[#allocation7 + $0x24] ss:$8 sps:$4 sm:$0xff]  }
  0x24   :  { %759 = vmatpush1.bf16.msra.mxu1 %v1527_v7  ;;  %707 = vmatprep.subr.bf16.mxu0 %v1528_v8  ;;  %v1545_v19 = vld [vmem:[#allocation7 + $0x130] ss:$8 sps:$4 sm:$0xff]   ;;  %v1548_v21 = vld [vmem:[#allocation7 + $0x124] ss:$8 sps:$4 sm:$0xff]   ;;  %v1550_v22 = vld [vmem:[#allocation7 + $0x20] ss:$8 sps:$4 sm:$0xff]  }
  0x25   :  { %760 = vmatprep.subr.bf16.mxu1 %v1530_v9  ;;  %v1551_v23 = vld [vmem:[#allocation7 + $0x120] ss:$8 sps:$4 sm:$0xff]   ;;  %v1552_v24 = vld [vmem:[#allocation7 + $0x14] ss:$8 sps:$4 sm:$0xff]   ;;  %v1556_v26 = vld [vmem:[#allocation7 + $0x10] ss:$8 sps:$4 sm:$0xff]  }
  0x26   :  { %v1554_v25 = vld [vmem:[#allocation7 + $0x114] ss:$8 sps:$4 sm:$0xff]   ;;  %v1557_v27 = vld [vmem:[#allocation7 + $0x110] ss:$8 sps:$4 sm:$0xff]   ;;  %v1558_v28 = vld [vmem:[#allocation7 + $0x4] ss:$8 sps:$4 sm:$0xff]  }
  0x27   :  { %708 = vmatpush1.bf16.msra.mxu0 %v1532_v10  ;;  %v1560_v29 = vld [vmem:[#allocation7 + $0x104] ss:$8 sps:$4 sm:$0xff]   ;;  %v1562_v30 = vld [vmem:[#allocation7] ss:$8 sps:$4 sm:$0xff]   ;;  %v1564_v32 = vld [vmem:[#allocation7 + $0xf4] ss:$8 sps:$4 sm:$0xff]  }
  0x28   :  { %761 = vmatpush1.bf16.msra.mxu1 %v1533_v11  ;;  %709 = vmatprep.subr.bf16.mxu0 %v1534_v12  ;;  %v1563_v31 = vld [vmem:[#allocation7 + $0x100] ss:$8 sps:$4 sm:$0xff]   ;;  %v1566_v33 = vld [vmem:[#allocation7 + $0x1f4] ss:$8 sps:$4 sm:$0xff]   ;;  %v1568_v34 = vld [vmem:[#allocation7 + $0xf0] ss:$8 sps:$4 sm:$0xff]  }
  0x29   :  { %762 = vmatprep.subr.bf16.mxu1 %v1536_v13  ;;  %v1569_v35 = vld [vmem:[#allocation7 + $0x1f0] ss:$8 sps:$4 sm:$0xff]   ;;  %v1570_v36 = vld [vmem:[#allocation7 + $0xe4] ss:$8 sps:$4 sm:$0xff]   ;;  %v1574_v38 = vld [vmem:[#allocation7 + $0xe0] ss:$8 sps:$4 sm:$0xff]  }
  0x2a   :  { %v1572_v37 = vld [vmem:[#allocation7 + $0x1e4] ss:$8 sps:$4 sm:$0xff]   ;;  %v1575_v39 = vld [vmem:[#allocation7 + $0x1e0] ss:$8 sps:$4 sm:$0xff]   ;;  %v1576_v40 = vld [vmem:[#allocation7 + $0xd4] ss:$8 sps:$4 sm:$0xff]  }
  0x2b   :  { %710 = vmatpush1.bf16.msra.mxu0 %v1538_v14  ;;  %v1578_v41 = vld [vmem:[#allocation7 + $0x1d4] ss:$8 sps:$4 sm:$0xff]   ;;  %v1580_v42 = vld [vmem:[#allocation7 + $0xd0] ss:$8 sps:$4 sm:$0xff]   ;;  %v1582_v44 = vld [vmem:[#allocation7 + $0xc4] ss:$8 sps:$4 sm:$0xff]  }
  0x2c   :  { %763 = vmatpush1.bf16.msra.mxu1 %v1539_v15  ;;  %711 = vmatprep.subr.bf16.mxu0 %v1540_v16  ;;  %v1581_v43 = vld [vmem:[#allocation7 + $0x1d0] ss:$8 sps:$4 sm:$0xff]   ;;  %v1584_v45 = vld [vmem:[#allocation7 + $0x1c4] ss:$8 sps:$4 sm:$0xff]   ;;  %v1586_v46 = vld [vmem:[#allocation7 + $0xc0] ss:$8 sps:$4 sm:$0xff]  }
  0x2d   :  { %764 = vmatprep.subr.bf16.mxu1 %v1542_v17  ;;  %v1587_v47 = vld [vmem:[#allocation7 + $0x1c0] ss:$8 sps:$4 sm:$0xff]   ;;  %v1588_v48 = vld [vmem:[#allocation7 + $0xb4] ss:$8 sps:$4 sm:$0xff]   ;;  %v1617_v51 = vld [vmem:[#allocation4 + $0xc] ss:$24 sps:$4 sm:$0xff]  }
  0x2e   :  { %v1614_v49 = vld [vmem:[#allocation4 + $0x4] ss:$24 sps:$4 sm:$0xff]   ;;  %v1592_v52 = vld [vmem:[#allocation7 + $0xb0] ss:$8 sps:$4 sm:$0xff]   ;;  %788 = vmatprep.mubr.bf16.mxu1 %v1617_v51  ;;  %v1598_v56 = vld [vmem:[#allocation7 + $0xa0] ss:$8 sps:$4 sm:$0xff]  }
  0x2f   :  { %712 = vmatpush1.bf16.msra.mxu0 %v1544_v18  ;;  %v1590_v50 = vld [vmem:[#allocation7 + $0x1b4] ss:$8 sps:$4 sm:$0xff]   ;;  %735 = vmatprep.mubr.bf16.mxu0 %v1614_v49  ;;  %v1593_v53 = vld [vmem:[#allocation7 + $0x1b0] ss:$8 sps:$4 sm:$0xff]   ;;  %v1594_v54 = vld [vmem:[#allocation7 + $0xa4] ss:$8 sps:$4 sm:$0xff]  }
  0x30   :  { %765 = vmatpush1.bf16.msra.mxu1 %v1545_v19  ;;  %713 = vmatprep.subr.bf16.mxu0 %v1546_v20  ;;  %v1596_v55 = vld [vmem:[#allocation7 + $0x1a4] ss:$8 sps:$4 sm:$0xff]   ;;  %v1599_v57 = vld [vmem:[#allocation7 + $0x1a0] ss:$8 sps:$4 sm:$0xff]   ;;  %v1600_v58 = vld [vmem:[#allocation7 + $0x94] ss:$8 sps:$4 sm:$0xff]  }
  0x31   :  { %766 = vmatprep.subr.bf16.mxu1 %v1548_v21  ;;  %v1602_v59 = vld [vmem:[#allocation7 + $0x194] ss:$8 sps:$4 sm:$0xff]   ;;  %v1604_v60 = vld [vmem:[#allocation7 + $0x90] ss:$8 sps:$4 sm:$0xff]   ;;  %v1606_v62 = vld [vmem:[#allocation7 + $0x84] ss:$8 sps:$4 sm:$0xff]  }
  0x32   :  { %v1605_v61 = vld [vmem:[#allocation7 + $0x190] ss:$8 sps:$4 sm:$0xff]   ;;  %v1608_v63 = vld [vmem:[#allocation7 + $0x184] ss:$8 sps:$4 sm:$0xff]   ;;  %v1610_v0 = vld [vmem:[#allocation7 + $0x80] ss:$8 sps:$4 sm:$0xff]  }
  0x33   :  { %714 = vmatpush1.bf16.msra.mxu0 %v1550_v22  ;;  %v1611_v1 = vld [vmem:[#allocation7 + $0x180] ss:$8 sps:$4 sm:$0xff]   ;;  %v1620_v2 = vld [vmem:[#allocation7 + $0x274] ss:$8 sps:$4 sm:$0xff]   ;;  %v1618_v5 = vld [vmem:[#allocation7 + $0x270] ss:$8 sps:$4 sm:$0xff]  }
  0x34   :  { %767 = vmatpush1.bf16.msra.mxu1 %v1551_v23  ;;  %715 = vmatprep.subr.bf16.mxu0 %v1552_v24  ;;  %v1612_v3 = vld [vmem:[#allocation4] ss:$24 sps:$4 sm:$0xff]   ;;  %v1623_v6 = vld [vmem:[#allocation7 + $0x264] ss:$8 sps:$4 sm:$0xff]   ;;  %v1659_v8 = vld [vmem:[#allocation4 + $0x3c] ss:$24 sps:$4 sm:$0xff]  }
  0x35   :  { %768 = vmatprep.subr.bf16.mxu1 %v1554_v25  ;;  %v1615_v4 = vld [vmem:[#allocation4 + $0x8] ss:$24 sps:$4 sm:$0xff]   ;;  %v1657_v7 = vld [vmem:[#allocation4 + $0x34] ss:$24 sps:$4 sm:$0xff]   ;;  %v1662_v12 = vld [vmem:[#allocation4 + $0x38] ss:$24 sps:$4 sm:$0xff]  }
  0x36   :  { %v1621_v9 = vld [vmem:[#allocation7 + $0x260] ss:$8 sps:$4 sm:$0xff]   ;;  %v1626_v10 = vld [vmem:[#allocation7 + $0x254] ss:$8 sps:$4 sm:$0xff]   ;;  %v1624_v13 = vld [vmem:[#allocation7 + $0x250] ss:$8 sps:$4 sm:$0xff]  }
  0x37   :  { %716 = vmatpush1.bf16.msra.mxu0 %v1556_v26  ;;  %v1661_v11 = vld [vmem:[#allocation4 + $0x30] ss:$24 sps:$4 sm:$0xff]   ;;  %v1674_v14 = vld [vmem:[#allocation4 + $0x14] ss:$24 sps:$4 sm:$0xff]   ;;  %vm878_vm0 = vcmask 1043456   ;;  %vm945_vm1 = vcmask 1046528  }
  0x38   :  { %769 = vmatpush1.bf16.msra.mxu1 %v1557_v27  ;;  %717 = vmatprep.subr.bf16.mxu0 %v1558_v28  ;;  %v1629_v15 = vld [vmem:[#allocation7 + $0x244] ss:$8 sps:$4 sm:$0xff]   ;;  %v1627_v16 = vld [vmem:[#allocation7 + $0x240] ss:$8 sps:$4 sm:$0xff]   ;;  %v1632_v17 = vld [vmem:[#allocation7 + $0x234] ss:$8 sps:$4 sm:$0xff]  }
  0x39   :  { %770 = vmatprep.subr.bf16.mxu1 %v1560_v29  ;;  %v1630_v18 = vld [vmem:[#allocation7 + $0x230] ss:$8 sps:$4 sm:$0xff]   ;;  %v1635_v19 = vld [vmem:[#allocation7 + $0x224] ss:$8 sps:$4 sm:$0xff]   ;;  %v1633_v20 = vld [vmem:[#allocation7 + $0x220] ss:$8 sps:$4 sm:$0xff]  }
  0x3a   :  { %v1638_v21 = vld [vmem:[#allocation7 + $0x214] ss:$8 sps:$4 sm:$0xff]   ;;  %v1636_v22 = vld [vmem:[#allocation7 + $0x210] ss:$8 sps:$4 sm:$0xff]   ;;  %v1641_v23 = vld [vmem:[#allocation7 + $0x204] ss:$8 sps:$4 sm:$0xff]  }
  0x3b   :  { %718 = vmatpush1.bf16.msra.mxu0 %v1562_v30  ;;  %v1639_v24 = vld [vmem:[#allocation7 + $0x200] ss:$8 sps:$4 sm:$0xff]   ;;  %v1644_v25 = vld [vmem:[#allocation7 + $0x2f4] ss:$8 sps:$4 sm:$0xff]   ;;  %v1642_v26 = vld [vmem:[#allocation7 + $0x2f0] ss:$8 sps:$4 sm:$0xff]  }
  0x3c   :  { %771 = vmatpush1.bf16.msra.mxu1 %v1563_v31  ;;  %719 = vmatprep.subr.bf16.mxu0 %v1564_v32  ;;  %v1647_v27 = vld [vmem:[#allocation7 + $0x2e4] ss:$8 sps:$4 sm:$0xff]   ;;  %v1645_v28 = vld [vmem:[#allocation7 + $0x2e0] ss:$8 sps:$4 sm:$0xff]   ;;  %v1650_v29 = vld [vmem:[#allocation7 + $0x2d4] ss:$8 sps:$4 sm:$0xff]  }
  0x3d   :  { %772 = vmatprep.subr.bf16.mxu1 %v1566_v33  ;;  %v1648_v30 = vld [vmem:[#allocation7 + $0x2d0] ss:$8 sps:$4 sm:$0xff]   ;;  %v1653_v31 = vld [vmem:[#allocation7 + $0x2c4] ss:$8 sps:$4 sm:$0xff]   ;;  %v1651_v32 = vld [vmem:[#allocation7 + $0x2c0] ss:$8 sps:$4 sm:$0xff]  }
  0x3e   :  { %v1656_v33 = vld [vmem:[#allocation7 + $0x2b4] ss:$8 sps:$4 sm:$0xff]   ;;  %s1750_s0 = smov 96   ;;  %vm988_vm2 = vcmask 1045504   ;;  %s1751_s1 = smov 64   ;;  %vm1152_vm3 = vcmask 1044480  }
  0x3f   :  { %720 = vmatpush2.bf16.msra.mxu0 %v1568_v34  ;;  %v1654_v34 = vld [vmem:[#allocation7 + $0x2b0] ss:$8 sps:$4 sm:$0xff]   ;;  %s1752_s7 = smov 32   ;;  %vm53_vm4 = vcmask 517120   ;;  %vm1209_vm7 = vcmask 1048320   ;;  %vm1755_vm8 = vmmov 0  }
  0x40   :  { %773 = vmatpush2.bf16.msra.mxu1 %v1569_v35  ;;  %721 = vmatprep.subr.bf16.mxu0 %v1570_v36  ;;  %v1665_v35 = vld [vmem:[#allocation7 + $0x2a4] ss:$8 sps:$4 sm:$0xff]   ;;  %v1663_v36 = vld [vmem:[#allocation7 + $0x2a0] ss:$8 sps:$4 sm:$0xff]   ;;  %vm1230_vm9 = vcmask 1041409   ;;  %vm1051_vm10 = vcmask 261120  }
  0x41   :  { %774 = vmatprep.subr.bf16.mxu1 %v1572_v37  ;;  %v1668_v37 = vld [vmem:[#allocation7 + $0x294] ss:$8 sps:$4 sm:$0xff]   ;;  %vm1272_vm11 = vcmask 523264   ;;  %s1756_s27 = smov [#allocation9]   ;;  %vm1346_vm12 = vcmask 25600  }
  0x42   :  { %s1354_s28 = sshll.u32 %s1756_s27, 4  ;;  %s1355_s28 = int_to_ptr.vmem [resolvable:$true] %s1354_s28 }
  0x43   :  { %722 = vmatpush2.bf16.msra.mxu0 %v1574_v38  ;;  %v1666_v38 = vld [vmem:[#allocation7 + $0x290] ss:$8 sps:$4 sm:$0xff]   ;;  %s1718_s29 = scalar_lea.vmem %s1355_s28, 32  ;;  %p1723_p11 = scmp.lt.s32.totalorder %s1355_s28, %s1355_s28 }
  0x44   :  { %775 = vmatpush2.bf16.msra.mxu1 %v1575_v39  ;;  %723 = vmatprep.subr.bf16.mxu0 %v1576_v40  ;;  %v1671_v39 = vld [vmem:[#allocation7 + $0x284] ss:$8 sps:$4 sm:$0xff]   ;;  %v1669_v40 = vld [vmem:[#allocation7 + $0x280] ss:$8 sps:$4 sm:$0xff]   ;;  %p1719_p10 = scmp.ne.s32.totalorder %s1355_s28, %s1718_s29  ;;  %p1724_p12 = scmp.lt.s32.totalorder %s1718_s29, %s1718_s29 }
  0x45   :  { %776 = vmatprep.subr.bf16.mxu1 %v1578_v41  ;;  %v1672_v41 = vld [vmem:[#allocation4 + $0x10] ss:$24 sps:$4 sm:$0xff]  }
  0x46   :  { %p1725_p13 = por %p1724_p12, %p1723_p11 }
  0x47   :  { %724 = vmatpush2.bf16.msra.mxu0 %v1580_v42  ;;  %v1675_v42 = vld [vmem:[#allocation4 + $0x44] ss:$24 sps:$4 sm:$0xff]  }
  0x48   :  { %777 = vmatpush2.bf16.msra.mxu1 %v1581_v43  ;;  %725 = vmatprep.subr.bf16.mxu0 %v1582_v44  ;;  %v1677_v43 = vld [vmem:[#allocation4 + $0x40] ss:$24 sps:$4 sm:$0xff]   ;;  %v862_v44 = vld [vmem:[#allocation2 + $0x30] sm:$0xf]  ;;  %p1726_p0 = pnand %p1725_p13, %p1719_p10 }
  0x49   :  { %778 = vmatprep.subr.bf16.mxu1 %v1584_v45  ;;  %866 = vst [vmem:[#allocation2 + $0x40] sm:$0xf] %v862_v44  ;;  %v863_v45 = vld [vmem:[#allocation2 + $0x20] sm:$0xf] }
  0x4a   :  { %867 = vst [vmem:[#allocation2] sm:$0xf] %v863_v45 }
  0x4b   :  { %726 = vmatpush2.bf16.msra.mxu0 %v1586_v46  ;;  %v864_v46 = vld [vmem:[#allocation2 + $0x48] sm:$0xf] }
  0x4c   :  { %779 = vmatpush2.bf16.msra.mxu1 %v1587_v47  ;;  %727 = vmatprep.subr.bf16.mxu0 %v1588_v48  ;;  %868 = vst [vmem:[#allocation2 + $0x28] sm:$0xf] %v864_v46  ;;  %v865_v47 = vld [vmem:[#allocation2 + $0x58] sm:$0xf] }
  0x4d   :  { %780 = vmatprep.subr.bf16.mxu1 %v1590_v50  ;;  %869 = vst [vmem:[#allocation2 + $0x38] sm:$0xf] %v865_v47 }
  0x4f   :  { %728 = vmatpush2.bf16.msra.mxu0 %v1592_v52 }
  0x50   :  { %781 = vmatpush2.bf16.msra.mxu1 %v1593_v53  ;;  %729 = vmatprep.subr.bf16.mxu0 %v1594_v54 }
  0x51   :  { %782 = vmatprep.subr.bf16.mxu1 %v1596_v55 }
  0x53   :  { %730 = vmatpush2.bf16.msra.mxu0 %v1598_v56 }
  0x54   :  { %783 = vmatpush2.bf16.msra.mxu1 %v1599_v57  ;;  %731 = vmatprep.subr.bf16.mxu0 %v1600_v58 }
  0x55   :  { %784 = vmatprep.subr.bf16.mxu1 %v1602_v59 }
  0x57   :  { %732 = vmatpush2.bf16.msra.mxu0 %v1604_v60 }
  0x58   :  { %785 = vmatpush2.bf16.msra.mxu1 %v1605_v61  ;;  %733 = vmatprep.subr.bf16.mxu0 %v1606_v62 }
  0x59   :  { %786 = vmatprep.subr.bf16.mxu1 %v1608_v63 }
  0x5b   :  { %734 = vmatpush2.bf16.msra.mxu0 %v1610_v0 }
  0x5c   :  { %787 = vmatpush2.bf16.msra.mxu1 %v1611_v1  ;;  %809 = vmatprep.subr.bf16.mxu0 %v1620_v2 }
  0x5e   :  { %736 = vmatmul.mubr.bf16.vlgmr.msra.gmra.mxu0 %v1612_v3 }
  0x5f   :  { %789 = vmatmul.mubr.bf16.vlgmr.msra.gmra.mxu1 %v1615_v4  ;;  %810 = vmatpush1.bf16.msra.mxu0 %v1618_v5 }
  0x60   :  { %745 = vmatprep.mubr.bf16.mxu0 %v1657_v7  ;;  %811 = vmatprep.subr.bf16.mxu0 %v1623_v6 }
  0x61   :  { %798 = vmatprep.mubr.bf16.mxu1 %v1659_v8 }
  0x63   :  { %812 = vmatpush1.bf16.msra.mxu0 %v1621_v9 }
  0x64   :  { %813 = vmatprep.subr.bf16.mxu0 %v1626_v10 }
  0x66   :  { %746 = vmatmul.mubr.bf16.gmra.mxu0 %v1661_v11 }
  0x67   :  { %799 = vmatmul.mubr.bf16.gmra.mxu1 %v1662_v12  ;;  %814 = vmatpush1.bf16.msra.mxu0 %v1624_v13 }
  0x68   :  { %841 = vmatprep.mubr.bf16.mxu0 %v1674_v14  ;;  %815 = vmatprep.subr.bf16.mxu0 %v1629_v15 }
  0x6b   :  { %816 = vmatpush1.bf16.msra.mxu0 %v1627_v16 }
  0x6c   :  { %817 = vmatprep.subr.bf16.mxu0 %v1632_v17 }
  0x6f   :  { %818 = vmatpush1.bf16.msra.mxu0 %v1630_v18 }
  0x70   :  { %819 = vmatprep.subr.bf16.mxu0 %v1635_v19 }
  0x73   :  { %820 = vmatpush1.bf16.msra.mxu0 %v1633_v20 }
  0x74   :  { %821 = vmatprep.subr.bf16.mxu0 %v1638_v21 }
  0x77   :  { %822 = vmatpush1.bf16.msra.mxu0 %v1636_v22 }
  0x78   :  { %823 = vmatprep.subr.bf16.mxu0 %v1641_v23 }
  0x7b   :  { %824 = vmatpush1.bf16.msra.mxu0 %v1639_v24 }
  0x7c   :  { %825 = vmatprep.subr.bf16.mxu0 %v1644_v25 }
  0x7f   :  { %826 = vmatpush2.bf16.msra.mxu0 %v1642_v26 }
  0x80   :  { %827 = vmatprep.subr.bf16.mxu0 %v1647_v27 }
  0x83   :  { %828 = vmatpush2.bf16.msra.mxu0 %v1645_v28 }
  0x84   :  { %829 = vmatprep.subr.bf16.mxu0 %v1650_v29 }
  0x87   :  { %830 = vmatpush2.bf16.msra.mxu0 %v1648_v30 }
  0x88   :  { %831 = vmatprep.subr.bf16.mxu0 %v1653_v31 }
  0x8b   :  { %832 = vmatpush2.bf16.msra.mxu0 %v1651_v32 }
  0x8c   :  { %833 = vmatprep.subr.bf16.mxu0 %v1656_v33 }
  0x8f   :  { %834 = vmatpush2.bf16.msra.mxu0 %v1654_v34 }
  0x90   :  { %835 = vmatprep.subr.bf16.mxu0 %v1665_v35 }
  0x93   :  { %836 = vmatpush2.bf16.msra.mxu0 %v1663_v36 }
  0x94   :  { %837 = vmatprep.subr.bf16.mxu0 %v1668_v37 }
  0x97   :  { %838 = vmatpush2.bf16.msra.mxu0 %v1666_v38 }
  0x98   :  { %839 = vmatprep.subr.bf16.mxu0 %v1671_v39 }
  0x9b   :  { %840 = vmatpush2.bf16.msra.mxu0 %v1669_v40 }
  0x9e   :  { %842 = vmatmul.mubr.bf16.vlgmr.msra.gmra.mxu0 %v1672_v41 }
  0x9f   :  { %851 = vmatprep.mubr.bf16.mxu0 %v1675_v42 }
  0xa6   :  { %852 = vmatmul.mubr.bf16.gmra.mxu0 %v1677_v43 }
 0x11e   :  { %v737_v48 = vpop.f32.mrf.mxu0 }
 0x11f   :  { %v790_v51 = vpop.f32.mrf.mxu1 }
 0x120   :  { %v739_v49 = vpop.f32.mrf.mxu0  ;;  %v791_v61 = vadd.f32 %v790_v51, %v737_v48 }
 0x121   :  { %v792_v54 = vpop.f32.mrf.mxu1 }
 0x122   :  { %v741_v50 = vpop.f32.mrf.mxu0  ;;  %v793_v63 = vadd.f32 %v792_v54, %v739_v49 }
 0x123   :  { %v794_v56 = vpop.f32.mrf.mxu1 }
 0x124   :  { %v743_v52 = vpop.f32.mrf.mxu0  ;;  %v795_v3 = vadd.f32 %v794_v56, %v741_v50 }
 0x125   :  { %v796_v58 = vpop.f32.mrf.mxu1 }
 0x126   :  { %v747_v53 = vpop.f32.mrf.mxu0  ;;  %v797_v7 = vadd.f32 %v796_v58, %v743_v52 }
 0x127   :  { %v800_v59 = vpop.f32.mrf.mxu1 }
 0x128   :  { %v749_v55 = vpop.f32.mrf.mxu0  ;;  %v801_v12 = vadd.f32 %v800_v59, %v747_v53 }
 0x129   :  { %v802_v1 = vpop.f32.mrf.mxu1 }
 0x12a   :  { %v751_v57 = vpop.f32.mrf.mxu0  ;;  %v803_v16 = vadd.f32 %v802_v1, %v749_v55 }
 0x12b   :  { %v804_v10 = vpop.f32.mrf.mxu1 }
 0x12c   :  { %v753_v60 = vpop.f32.mrf.mxu0  ;;  %v805_v22 = vadd.f32 %v804_v10, %v751_v57 }
 0x12d   :  { %v806_v20 = vpop.f32.mrf.mxu1 }
 0x12e   :  { %v807_v27 = vadd.f32 %v806_v20, %v753_v60 }
 0x15e   :  { %v843_v62 = vpop.f32.mrf.mxu0 }
 0x15f   :  { %v844_v0 = vadd.f32 %v843_v62, %v791_v61 }
 0x160   :  { %v845_v2 = vpop.f32.mrf.mxu0 }
 0x161   :  { %v879_v4 = vrot.slane %v844_v0, 4  ;;  %v846_v5 = vadd.f32 %v845_v2, %v793_v63 }
 0x162   :  { %v847_v6 = vpop.f32.mrf.mxu0 }
 0x163   :  { %903 = vst [vmem:[#allocation2 + $0x40] sm:$0xf0] %v879_v4  ;;  %v880_v8 = vrot.slane %v846_v5, 4  ;;  %v848_v9 = vadd.f32 %v847_v6, %v795_v3 }
 0x164   :  { %v849_v11 = vpop.f32.mrf.mxu0 }
 0x165   :  { %904 = vst [vmem:[#allocation2] sm:$0xf0] %v880_v8  ;;  %v881_v13 = vrot.slane %v848_v9, 4  ;;  %v850_v14 = vadd.f32 %v849_v11, %v797_v7 }
 0x166   :  { %v853_v15 = vpop.f32.mrf.mxu0 }
 0x167   :  { %v1794_v17 = vsel %vm878_vm0, %v879_v4, %v881_v13  ;;  %907 = vst [vmem:[#allocation2 + $0x30] sm:$0xf] %v881_v13  ;;  %v883_v18 = vrot.slane %v850_v14, 4  ;;  %v854_v19 = vadd.f32 %v853_v15, %v801_v12 }
 0x168   :  { %v855_v21 = vpop.f32.mrf.mxu0 }
 0x169   :  { %v1797_v23 = vsel %vm878_vm0, %v880_v8, %v883_v18  ;;  %908 = vst [vmem:[#allocation2 + $0x20] sm:$0xf] %v883_v18  ;;  %v885_v24 = vrot.slane %v854_v19, 4  ;;  %v856_v25 = vadd.f32 %v855_v21, %v803_v16 }
 0x16a   :  { %v857_v26 = vpop.f32.mrf.mxu0  ;;  %v1085_v35 = vrot.slane %v1797_v23, 1  ;;  %v1119_v44 = vrot.slane %v1797_v23, 2  ;;  %v1154_v54 = vrot.slane %v1797_v23, 3  ;;  %v1188_v55 = vrot.slane %v1797_v23, 4 }
 0x16b   :  { %909 = vst [vmem:[#allocation2 + $0x28] sm:$0xf0] %v885_v24  ;;  %v886_v28 = vrot.slane %v856_v25, 4  ;;  %v858_v29 = vadd.f32 %v857_v26, %v805_v22 }
 0x16c   :  { %v859_v30 = vpop.f32.mrf.mxu0  ;;  %v1072_v31 = vld [vmem:[#allocation2] sm:$0xfe] }
 0x16d   :  { %910 = vst [vmem:[#allocation2 + $0x38] sm:$0xf0] %v886_v28  ;;  %v887_v32 = vrot.slane %v858_v29, 4  ;;  %v860_v33 = vadd.f32 %v859_v30, %v807_v27  ;;  %v1084_v34 = vrot.slane %v1072_v31, 1  ;;  %v1110_v39 = vld [vmem:[#allocation2] sm:$0xfc] }
 0x16e   :  { %v1118_v50 = vrot.slane %v1110_v39, 2  ;;  %v1144_v53 = vld [vmem:[#allocation2] sm:$0xf8]  ;;  %v936_v30 = vld [vmem:[#allocation2 + $0x30] sm:$0x3]  ;;  %v947_v31 = vrot.slane %v1794_v17, 1 }
 0x16f   :  { %v1801_v36 = vsel %vm878_vm0, %v885_v24, %v887_v32  ;;  %913 = vst [vmem:[#allocation2 + $0x48] sm:$0xf] %v887_v32  ;;  %v889_v37 = vrot.slane %v860_v33, 4  ;;  %v1086_v38 = vsel %vm945_vm1, %v1084_v34, %v1085_v35  ;;  %v1153_v60 = vrot.slane %v1144_v53, 3  ;;  %v1179_v62 = vld [vmem:[#allocation2] sm:$0xf0] }
 0x170   :  { %v1111_v40 = vld [vmem:[#allocation2 + $0x20] sm:$0x3]  ;;  %1094 = vrot.lane.b32.xlu0 %v1086_v38, %s1750_s0  ;;  %v1120_v58 = vsel %vm988_vm2, %v1118_v50, %v1119_v44  ;;  %v1187_v3 = vrot.slane %v1179_v62, 4  ;;  %v935_v24 = vld [vmem:[#allocation2 + $0x40] sm:$0xfc]  ;;  %v949_v34 = vrot.slane %v936_v30, 1 }
 0x171   :  { %v1145_v41 = vld [vmem:[#allocation2 + $0x20] sm:$0x7]  ;;  %v1806_v43 = vsel %vm878_vm0, %v886_v28, %v889_v37  ;;  %914 = vst [vmem:[#allocation2 + $0x58] sm:$0xf] %v889_v37  ;;  %v1121_v45 = vrot.slane %v1111_v40, 2  ;;  %v1155_v7 = vsel %vm1152_vm3, %v1153_v60, %v1154_v54  ;;  %v946_v29 = vrot.slane %v935_v24, 1 }
 0x172   :  { %v1074_v42 = vld [vmem:[#allocation2 + $0x20] sm:$0x1]  ;;  %v1156_v48 = vrot.slane %v1145_v41, 3  ;;  %v1090_v1 = vrot.slane %v1806_v43, 1  ;;  %v1124_v10 = vrot.slane %v1806_v43, 2  ;;  %v1829_v12 = vsel %vm878_vm0, %v1187_v3, %v1188_v55  ;;  %v1071_v24 = vld [vmem:[#allocation2 + $0x28] sm:$0xff] }
 0x173   :  { %v1087_v46 = vrot.slane %v1074_v42, 1  ;;  %v1122_v47 = vsel %vm988_vm2, %v1119_v44, %v1121_v45  ;;  %v1180_v51 = vld [vmem:[#allocation2 + $0x20] sm:$0xf]  ;;  %v1193_v14 = vrot.slane %v1806_v43, 4  ;;  %v1159_v25 = vrot.slane %v1806_v43, 3 }
 0x174   :  { %1130 = vrot.lane.b32.xlu1 %v1122_v47, %s1751_s1  ;;  %v1075_v52 = vld [vmem:[#allocation2 + $0x38] sm:$0xfe]  ;;  %v1190_v56 = vrot.slane %v1180_v51, 4  ;;  %v1157_v57 = vsel %vm1152_vm3, %v1154_v54, %v1156_v48  ;;  %v948_v33 = vsel %vm945_vm1, %v946_v29, %v947_v31  ;;  %v950_v38 = vsel %vm945_vm1, %v947_v31, %v949_v34  ;;  %v980_v41 = vld [vmem:[#allocation2 + $0x40] sm:$0xf8] }
 0x175   :  { %v1088_v49 = vsel %vm945_vm1, %v1085_v35, %v1087_v46  ;;  %v1089_v59 = vrot.slane %v1075_v52, 1  ;;  %v1112_v61 = vld [vmem:[#allocation2 + $0x38] sm:$0xfc]  ;;  %v937_v35 = vld [vmem:[#allocation2 + $0x28] sm:$0xfc]  ;;  %v952_v42 = vrot.slane %v1801_v36, 1 }
 0x176   :  { %1096 = vrot.lane.b32.xlu0 %v1088_v49, %s1750_s0  ;;  %v1820_v0 = vsel %vm878_vm0, %v1188_v55, %v1190_v56  ;;  %v1123_v2 = vrot.slane %v1112_v61, 2  ;;  %v1181_v4 = vld [vmem:[#allocation2 + $0x38] sm:$0xf0]  ;;  %v938_v37 = vld [vmem:[#allocation2 + $0x48] sm:$0x3]  ;;  %v951_v39 = vrot.slane %v937_v35, 1  ;;  %v917_v61 = vlaneseq }
 0x177   :  { %v1091_v6 = vsel %vm945_vm1, %v1089_v59, %v1090_v1  ;;  %v1146_v9 = vld [vmem:[#allocation2 + $0x38] sm:$0xf8]  ;;  %v1192_v13 = vrot.slane %v1181_v4, 4  ;;  %v954_v40 = vrot.slane %v938_v37, 1  ;;  %v989_v45 = vrot.slane %v980_v41, 2 }
 0x178   :  { %1165 = vrot.lane.b32.xlu1 %v1157_v57, %s1752_s7  ;;  %v1077_v63 = vld [vmem:[#allocation2 + $0x58] sm:$0x1]  ;;  %v1125_v16 = vsel %vm988_vm2, %v1123_v2, %v1124_v10  ;;  %v1158_v18 = vrot.slane %v1146_v9, 3  ;;  %v953_v43 = vsel %vm945_vm1, %v951_v39, %v952_v42  ;;  %v981_v46 = vld [vmem:[#allocation2 + $0x30] sm:$0x7]  ;;  %v990_v47 = vrot.slane %v1794_v17, 2 }
 0x179   :  { %v1182_v5 = vld [vmem:[#allocation2 + $0x58] sm:$0xf]  ;;  %v1092_v8 = vrot.slane %v1077_v63, 1  ;;  %v1835_v21 = vsel %vm878_vm0, %v1192_v13, %v1193_v14  ;;  %v955_v44 = vsel %vm945_vm1, %v952_v42, %v954_v40  ;;  %v992_v49 = vrot.slane %v981_v46, 2  ;;  %v982_v50 = vld [vmem:[#allocation2 + $0x28] sm:$0xf8] }
 0x17a   :  { %1128 = vrot.lane.b32.xlu0 %v1120_v58, %s1751_s1  ;;  %v1113_v11 = vld [vmem:[#allocation2 + $0x58] sm:$0x3]  ;;  %v1195_v15 = vrot.slane %v1182_v5, 4  ;;  %v1160_v27 = vsel %vm1152_vm3, %v1158_v18, %v1159_v25  ;;  %v991_v48 = vsel %vm988_vm2, %v989_v45, %v990_v47  ;;  %v983_v51 = vld [vmem:[#allocation2 + $0x48] sm:$0x7]  ;;  %v994_v53 = vrot.slane %v982_v50, 2 }
 0x17b   :  { %v1093_v19 = vsel %vm945_vm1, %v1090_v1, %v1092_v8  ;;  %v1126_v20 = vrot.slane %v1113_v11, 2  ;;  %v1147_v23 = vld [vmem:[#allocation2 + $0x58] sm:$0x7]  ;;  %v993_v52 = vsel %vm988_vm2, %v990_v47, %v992_v49  ;;  %v997_v54 = vrot.slane %v983_v51, 2 }
 0x17c   :  { %1098 = vrot.lane.b32.xlu1 %v1091_v6, %s1750_s0  ;;  %v1838_v22 = vsel %vm878_vm0, %v1193_v14, %v1195_v15  ;;  %v1161_v28 = vrot.slane %v1147_v23, 3  ;;  %v995_v55 = vrot.slane %v1801_v36, 2  ;;  %v1264_v58 = vld [vmem:[%s1966_s3 + $0x38] sm:$0xff]  ;;  %v1753_v59 = vmov 0.0   ;;  %v1070_v6 = vld [vmem:[#allocation2 + $0x40] sm:$0xff] }
 0x17d   :  { %v1127_v26 = vsel %vm988_vm2, %v1124_v10, %v1126_v20  ;;  %1484 = vmatprep.subr.mxu1 %v1753_v59  ;;  %v1754_v60 = vmov -inf   ;;  %v918_v63 = vshrl.u32 %v917_v61, 7  ;;  %1500 = vmatprep.mubr.msk.f32.mxu1 %vm1755_vm8, %v1753_v59 }
 0x17e   :  { %1163 = vrot.lane.b32.xlu0 %v1155_v7, %s1752_s7  ;;  %v1162_v32 = vsel %vm1152_vm3, %v1159_v25, %v1161_v28  ;;  %v996_v56 = vsel %vm988_vm2, %v994_v53, %v995_v55  ;;  %v998_v57 = vsel %vm988_vm2, %v995_v55, %v997_v54  ;;  %54 = vst.msk [vmem:[#allocation3] sm:$0x3] %vm53_vm4, %v1754_v60  ;;  %v1262_v60 = vld [vmem:[%s1966_s3 + $0x28] sm:$0xff] }
 0x17f   :  { %1485 = vmatpush3.msra.mxu1 %v1264_v58  ;;  %v919_v3 = vadd.s32 8, %v918_v63  ;;  %v1882_v13 = vadd.s32 4294967292, %v918_v63  ;;  %v931_v63 = vld [vmem:[#allocation2 + $0x30] sm:$0x1] }
 0x180   :  { %1100 = vrot.lane.b32.xlu1 %v1093_v19, %s1750_s0  ;;  %1486 = vmatprep.subr.mxu1 %v1753_v59 }
 0x181   :  { %v1880_v9 = vadd.s32 4294967292, %v919_v3  ;;  %vm923_vm6 = vcmp.ge.s32.totalorder %v1882_v13, 0 }
 0x182   :  { %1132 = vrot.lane.b32.xlu0 %v1125_v16, %s1751_s1 }
 0x183   :  { %vm926_vm5 = vcmp.lt.s32.totalorder %v1880_v9, 8 }
 0x184   :  { %1134 = vrot.lane.b32.xlu1 %v1127_v26, %s1751_s1 }
 0x186   :  { %1167 = vrot.lane.b32.xlu0 %v1160_v27, %s1752_s7 }
 0x188   :  { %1169 = vrot.lane.b32.xlu1 %v1162_v32, %s1752_s7 }
 0x18a   :  { %956 = vrot.lane.b32.xlu0 %v948_v33, %s1750_s0 }
 0x18c   :  { %958 = vrot.lane.b32.xlu1 %v950_v38, %s1750_s0 }
 0x18e   :  { %960 = vrot.lane.b32.xlu0 %v949_v34, %s1750_s0 }
 0x190   :  { %962 = vrot.lane.b32.xlu1 %v953_v43, %s1750_s0 }
 0x192   :  { %964 = vrot.lane.b32.xlu0 %v955_v44, %s1750_s0 }
 0x194   :  { %966 = vrot.lane.b32.xlu1 %v954_v40, %s1750_s0 }
 0x196   :  { %999 = vrot.lane.b32.xlu0 %v991_v48, %s1751_s1 }
 0x198   :  { %1001 = vrot.lane.b32.xlu1 %v993_v52, %s1751_s1 }
 0x19a   :  { %1003 = vrot.lane.b32.xlu0 %v992_v49, %s1751_s1 }
 0x19c   :  { %1005 = vrot.lane.b32.xlu1 %v996_v56, %s1751_s1  ;;  %v929_v56 = vld [vmem:[#allocation2 + $0x40] sm:$0xfe] }
 0x19e   :  { %1007 = vrot.lane.b32.xlu0 %v998_v57, %s1751_s1 }
 0x1a0   :  { %1009 = vrot.lane.b32.xlu1 %v997_v54, %s1751_s1 }
 0x1e2   :  { %v1095_v62 = vpop.permute.xlu0 %1094 }
 0x1e3   :  { %v1106_v10 = vadd.f32 %v1095_v62, %v1070_v6 }
 0x1e6   :  { %v1131_v1 = vpop.permute.xlu1 %1130 }
 0x1e8   :  { %v1097_v2 = vpop.permute.xlu0 %1096 }
 0x1e9   :  { %v1107_v4 = vadd.f32 %v1097_v2, %v1794_v17  ;;  %v1261_v2 = vld [vmem:[%s1966_s3 + $0x20] sm:$0xff] }
 0x1ea   :  { %v1166_v7 = vpop.permute.xlu1 %1165 }
 0x1eb   :  { %v1141_v5 = vadd.f32 %v1131_v1, %v1107_v4 }
 0x1ec   :  { %v1129_v8 = vpop.permute.xlu0 %1128 }
 0x1ed   :  { %v1176_v11 = vadd.f32 %v1166_v7, %v1141_v5  ;;  %v1140_v15 = vadd.f32 %v1129_v8, %v1106_v10  ;;  %v1260_v10 = vld [vmem:[%s1966_s3 + $0x18] sm:$0xff] }
 0x1ee   :  { %v1099_v16 = vpop.permute.xlu1 %1098 }
 0x1ef   :  { %v1202_v14 = vadd.f32 %v1820_v0, %v1176_v11  ;;  %v1108_v27 = vadd.f32 %v1099_v16, %v1071_v24  ;;  %v932_v11 = vld [vmem:[#allocation2 + $0x28] sm:$0xfe] }
 0x1f0   :  { %v1164_v18 = vpop.permute.xlu0 %1163 }
 0x1f1   :  { %v1175_v19 = vadd.f32 %v1164_v18, %v1140_v15  ;;  %v1206_v23 = vsel %vm926_vm5, %v1202_v14, -inf }
 0x1f2   :  { %v1101_v25 = vpop.permute.xlu1 %1100  ;;  %v1211_v29 = vsel %vm1209_vm7, %v1206_v23, -inf }
 0x1f3   :  { %v1201_v20 = vadd.f32 %v1829_v12, %v1175_v19  ;;  %v1109_v12 = vadd.f32 %v1101_v25, %v1801_v36 }
 0x1f4   :  { %v1133_v26 = vpop.permute.xlu0 %1132 }
 0x1f5   :  { %v1205_v0 = vsel %vm923_vm6, %v1201_v20, -inf  ;;  %v1142_v31 = vadd.f32 %v1133_v26, %v1108_v27 }
 0x1f6   :  { %v1210_v28 = vsel %vm1209_vm7, %v1205_v0, -inf  ;;  %v1135_v32 = vpop.permute.xlu1 %1134 }
 0x1f7   :  { %v1212_v30 = vmax.f32 %v1210_v28, %v1211_v29  ;;  %v1143_v37 = vadd.f32 %v1135_v32, %v1109_v12  ;;  %v1258_v28 = vld [vmem:[%s1966_s3 + $0x8] sm:$0xff] }
 0x1f8   :  { %v1168_v33 = vpop.permute.xlu0 %1167 }
 0x1f9   :  { %v1177_v34 = vadd.f32 %v1168_v33, %v1142_v31  ;;  %v1213_v35 = vrot.slane %v1212_v30, 4  ;;  %v934_v33 = vld [vmem:[#allocation2 + $0x48] sm:$0x1] }
 0x1fa   :  { %v1170_v39 = vpop.permute.xlu1 %1169 }
 0x1fb   :  { %v1203_v38 = vadd.f32 %v1835_v21, %v1177_v34  ;;  %v1178_v41 = vadd.f32 %v1170_v39, %v1143_v37  ;;  %v1214_v42 = vmax.f32 %v1212_v30, %v1213_v35  ;;  %v1257_v35 = vld [vmem:[%s1966_s3] sm:$0xff] }
 0x1fc   :  { %v957_v40 = vpop.permute.xlu0 %956 }
 0x1fd   :  { %v1207_v43 = vsel %vm923_vm6, %v1203_v38, -inf  ;;  %v1204_v44 = vadd.f32 %v1838_v22, %v1178_v41  ;;  %v1215_v50 = vrot.slane %v1214_v42, 2  ;;  %v1263_v22 = vld [vmem:[%s1966_s3 + $0x30] sm:$0xff]  ;;  %v974_v61 = vadd.f32 %v957_v40, %v929_v56 }
 0x1fe   :  { %v959_v45 = vpop.permute.xlu1 %958  ;;  %v1219_v48 = vsel %vm1209_vm7, %v1207_v43, -inf  ;;  %1487 = vmatpush3.msra.mxu1 %v1263_v22 }
 0x1ff   :  { %v1208_v47 = vsel %vm926_vm5, %v1204_v44, -inf  ;;  %v1216_v54 = vmax.f32 %v1214_v42, %v1215_v50  ;;  %1488 = vmatprep.subr.mxu1 %v1753_v59  ;;  %v975_v3 = vadd.f32 %v959_v45, %v1794_v17  ;;  %v1259_v17 = vld [vmem:[%s1966_s3 + $0x10] sm:$0xff] }
 0x200   :  { %v961_v46 = vpop.permute.xlu0 %960  ;;  %v1220_v49 = vsel %vm1209_vm7, %v1208_v47, -inf  ;;  %1489 = vmatpush3.msra.mxu1 %v1262_v60 }
 0x201   :  { %v1221_v21 = vmax.f32 %v1219_v48, %v1220_v49  ;;  %v1217_v1 = vrot.slane %v1216_v54, 1  ;;  %v976_v4 = vadd.f32 %v961_v46, %v931_v63  ;;  %1490 = vmatprep.subr.mxu1 %v1753_v59  ;;  %v1240_v63 = vld [vmem:[#allocation3] sm:$0x3] }
 0x202   :  { %v963_v51 = vpop.permute.xlu1 %962  ;;  %1491 = vmatpush3.msra.mxu1 %v1261_v2 }
 0x203   :  { %v1222_v53 = vrot.slane %v1221_v21, 4  ;;  %v977_v18 = vadd.f32 %v963_v51, %v932_v11  ;;  %v1218_v19 = vmax.f32 %v1216_v54, %v1217_v1  ;;  %1492 = vmatprep.subr.mxu1 %v1753_v59 }
 0x204   :  { %v965_v52 = vpop.permute.xlu0 %964  ;;  %1493 = vmatpush3.msra.mxu1 %v1260_v10 }
 0x205   :  { %v1223_v55 = vmax.f32 %v1221_v21, %v1222_v53  ;;  %v978_v26 = vadd.f32 %v965_v52, %v1801_v36  ;;  %1494 = vmatprep.subr.mxu1 %v1753_v59 }
 0x206   :  { %v967_v57 = vpop.permute.xlu1 %966  ;;  %1495 = vmatpush3.msra.mxu1 %v1259_v17 }
 0x207   :  { %v1224_v62 = vrot.slane %v1223_v55, 2  ;;  %1496 = vmatprep.subr.mxu1 %v1753_v59  ;;  %v979_v37 = vadd.f32 %v967_v57, %v934_v33 }
 0x208   :  { %v1000_v58 = vpop.permute.xlu0 %999  ;;  %1497 = vmatpush3.msra.mxu1 %v1258_v28 }
 0x209   :  { %v1017_v5 = vadd.f32 %v1000_v58, %v974_v61  ;;  %v1225_v6 = vmax.f32 %v1223_v55, %v1224_v62  ;;  %1498 = vmatprep.subr.mxu1 %v1753_v59 }
 0x20a   :  { %v1002_v7 = vpop.permute.xlu1 %1001  ;;  %1499 = vmatpush3.msra.mxu1 %v1257_v35 }
 0x20b   :  { %v1018_v14 = vadd.f32 %v1002_v7, %v975_v3  ;;  %v1226_v16 = vrot.slane %v1225_v6, 1  ;;  %v1033_v20 = vrot.slane %v1017_v5, 1  ;;  %v1472_v3 = vld [vmem:[%s1965_s2] ss:$0 sm:$0xff] }
 0x20c   :  { %v1004_v8 = vpop.permute.xlu0 %1003  ;;  %v1473_v7 = vld [vmem:[%s1967_s4] ss:$0 sm:$0xff] }
 0x20d   :  { %v1019_v15 = vadd.f32 %v1004_v8, %v976_v4  ;;  %v1034_v23 = vrot.slane %v1018_v14, 1  ;;  %v1227_v25 = vmax.f32 %v1225_v6, %v1226_v16 }
 0x20e   :  { %v1006_v27 = vpop.permute.xlu1 %1005 }
 0x20f   :  { %v1036_v24 = vrot.slane %v1019_v15, 1  ;;  %v1035_v29 = vsel %vm945_vm1, %v1033_v20, %v1034_v23  ;;  %v1020_v31 = vadd.f32 %v1006_v27, %v977_v18  ;;  %v1235_v32 = vsel %vm1230_vm9, %v1227_v25, %v1218_v19 }
 0x210   :  { %v1008_v0 = vpop.permute.xlu0 %1007  ;;  %v1047_v36 = vsel %vm923_vm6, %v1035_v29, -inf  ;;  %1236 = vrot.lane.b32.xlu0 %v1235_v32, %s1751_s1 }
 0x211   :  { %v1037_v30 = vsel %vm945_vm1, %v1034_v23, %v1036_v24  ;;  %v1021_v34 = vadd.f32 %v1008_v0, %v978_v26  ;;  %v1052_v38 = vsel %vm1051_vm10, %v1047_v36, -inf  ;;  %v1038_v40 = vrot.slane %v1020_v31, 1 }
 0x212   :  { %v1048_v12 = vsel %vm926_vm5, %v1037_v30, -inf  ;;  %v1010_v43 = vpop.permute.xlu1 %1009 }
 0x213   :  { %v1053_v39 = vsel %vm1051_vm10, %v1048_v12, -inf  ;;  %v1039_v42 = vrot.slane %v1021_v34, 1  ;;  %v1022_v44 = vadd.f32 %v1010_v43, %v979_v37 }
 0x214   :  { %v1054_v41 = vmax.f32 %v1052_v38, %v1053_v39 }
 0x215   :  { %v1040_v46 = vsel %vm945_vm1, %v1038_v40, %v1039_v42  ;;  %v1041_v47 = vrot.slane %v1022_v44, 1 }
 0x216   :  { %v1055_v45 = vrot.slane %v1054_v41, 4  ;;  %v1049_v49 = vsel %vm923_vm6, %v1040_v46, -inf }
 0x217   :  { %v1042_v50 = vsel %vm945_vm1, %v1039_v42, %v1041_v47  ;;  %v1061_v51 = vsel %vm1051_vm10, %v1049_v49, -inf }
 0x218   :  { %v1056_v48 = vmax.f32 %v1054_v41, %v1055_v45  ;;  %v1050_v21 = vsel %vm926_vm5, %v1042_v50, -inf }
 0x219   :  { %v1062_v52 = vsel %vm1051_vm10, %v1050_v21, -inf }
 0x21a   :  { %v1063_v59 = vmax.f32 %v1061_v51, %v1062_v52  ;;  %v1057_v53 = vrot.slane %v1056_v48, 2 }
 0x21c   :  { %v1064_v54 = vrot.slane %v1063_v59, 4  ;;  %v1058_v56 = vmax.f32 %v1056_v48, %v1057_v53 }
 0x21e   :  { %v1065_v55 = vmax.f32 %v1063_v59, %v1064_v54  ;;  %v1059_v58 = vrot.slane %v1058_v56, 1 }
 0x220   :  { %v1066_v57 = vrot.slane %v1065_v55, 2  ;;  %v1060_v13 = vmax.f32 %v1058_v56, %v1059_v58 }
 0x222   :  { %v1067_v22 = vmax.f32 %v1065_v55, %v1066_v57 }
 0x224   :  { %v1068_v60 = vrot.slane %v1067_v22, 1 }
 0x226   :  { %v1069_v61 = vmax.f32 %v1067_v22, %v1068_v60 }
 0x228   :  { %v1231_v62 = vsel %vm1230_vm9, %v1069_v61, %v1060_v13 }
 0x282   :  { %v1237_v9 = vpop.permute.xlu0 %1236 }
 0x283   :  { %v1239_v1 = vsel %vm1051_vm10, %v1231_v62, %v1237_v9 }
 0x284   :  { %v1241_v2 = vmax.f32 %v1240_v63, %v1239_v1 }
 0x286   :  { %1243 = vst.msk [vmem:[#allocation3] sm:$0x3] %vm53_vm4, %v1241_v2 }
 0x28d   :  { %v1247_v4 = vld [vmem:[#allocation3] sm:$0x3] }
 0x28e   :  { %v1255_v5 = vadd.f32 %v1472_v3, %v1247_v4 }
 0x290   :  { %v1256_v6 = vmax.f32 %v1255_v5, 0.0 }
 0x292   :  { %1501 = vmatmul.mubr.msk.f32.vlgmr.msra.gmra.mxu1 %vm1272_vm11, %v1256_v6 }
 0x352   :  { %v1342_v8 = vpop.f32.mrf.mxu1 }
 0x353   :  { %v1343_v10 = vadd.f32 %v1473_v7, %v1342_v8 }
 0x354   :  { %v1502_v11 = vpop.f32.mrf.mxu1 }
 0x355   :  { %1347 = vst.msk [vmem:[#allocation9] sm:$0x3] %vm1346_vm12, %v1343_v10 }
 0x356   :  { %1729 = shalt.err (!%p1726_p0)
}
 0x357   :  { %1357 = dma.vmem_to_hbm [thread:$0]  %s1355_s28, 32, %s1968_s5, [#allocation6]  }
 0x358   :  { %1742 = dma.done.wait [#allocation6], 32  }
 0x359   :  { %1743 = vsyncadd [#allocation6], 4294967264 }
 0x35a   :  { %1361 = vsyncpa [#allocation5], 1 }
 0x35b   :  { %1362 = vsyncpa [#allocation8], 1 }
 0x35c   :  { %1363 = vsyncpa [#allocation6], 1 }

</bundles_post_ra>
